<compile_context>
chip_gen: v6e
topology: v6e:2x2x1
jax: 0.10.0
libtpu: 0.0.40
codegen_flags: <defaults>
</compile_context>

<pallas_src>
import jax
import jax.numpy as jnp
from jax.experimental import pallas as pl
from jax.experimental.pallas import tpu as pltpu


_LANE = 128      # vreg lane width
_SUBLANE = 8     # vreg sublane count (f32)


def _round_up(x: int, m: int) -> int:
    return ((x + m - 1) // m) * m


# --------------------------------------------------------------------------
# Kernel
# --------------------------------------------------------------------------
def _critic_mlp_kernel(x_ref, w1_ref, b1_ref, w2_ref, b2_ref, w3_ref, b3_ref,
                       out_ref):
    """Fused 3-layer MLP for one batch tile.

    x_ref  : [tile_b, obs_dim]  f32 (original state dtype, unpadded features)
    w1_ref : [obs_dim, H1p]     compute dtype (bf16)
    b1_ref : [1, H1p]           f32
    w2_ref : [H1p, H2p]         compute dtype (bf16)
    b2_ref : [1, H2p]           f32
    w3_ref : [1, H2p]           f32 (final layer as a row vector)
    b3_ref : [1, 1]             f32 scalar in SMEM
    out_ref: [1, tile_b]        f32, lane-dense value row
    """
    # In-kernel cast to the streaming/compute dtype (state arrives as raw f32).
    x = x_ref[...].astype(w1_ref.dtype)

    # Layer 1: MXU matmul (bf16 in, f32 accumulate) + bias + ReLU.
    # K = obs_dim (unpadded); Mosaic pads the MXU K dimension internally.
    h1 = jnp.dot(x, w1_ref[...], preferred_element_type=jnp.float32)
    h1 = jnp.maximum(h1 + b1_ref[...], 0.0)

    # Layer 2.
    h2 = jnp.dot(h1.astype(w2_ref.dtype), w2_ref[...],
                 preferred_element_type=jnp.float32)
    h2 = jnp.maximum(h2 + b2_ref[...], 0.0)

    # Final N=1 layer: VPU multiply + cross-lane (XLU) reduction instead of an
    # MXU pass that would pay full fill/drain latency for a single column.
    v = jnp.sum(h2 * w3_ref[...], axis=-1)            # [tile_b] f32
    v = v + b3_ref[0, 0]

    # Lane-dense store: one [1, tile_b] row (unmasked vst) instead of a masked
    # [tile_b, 1] column store.
    out_ref[...] = v.reshape(1, -1).astype(out_ref.dtype)


# --------------------------------------------------------------------------
# Wrapper helpers
# --------------------------------------------------------------------------
def _vmem_budget_bytes() -> int:
    """Generation-aware VMEM budget: ~half of physical VMEM.

    v5e/v6e: 128 MiB -> 64 MiB budget; v7x: 64 MiB -> 32 MiB budget.
    """
    try:
        cap = int(pltpu.get_tpu_info().vmem_capacity_bytes)
    except Exception:
        cap = 128 * 1024 * 1024
    return cap // 2


def _pick_tile_b(batch, obs_dim, h1p, h2p, wbytes, tile_b, budget_bytes):
    """Pick a lane-aligned batch tile that fits the VMEM budget."""
    max_b = _round_up(batch, _LANE)
    if tile_b is None:
        # Per-grid-step overhead (~0.35us) dominates for small tiles; default
        # to the largest reasonable tile and shrink to fit the budget.
        tile_b = min(8192, max_b)
    tile_b = max(_LANE, _round_up(tile_b, _LANE))
    tile_b = min(tile_b, max_b)          # don't over-pad tiny batches
    # Guarantee >=2 grid steps for moderate batches so both v7x TensorCores
    # get work under dimension_semantics=("parallel",). Harmless on v5e/v6e.
    if batch >= 2 * _LANE:
        tile_b = min(tile_b, _round_up((batch + 1) // 2, _LANE))
    # Rough VMEM model: Pallas double-buffers every BlockSpec operand (even
    # constant-index weights), f32 activations live alongside.
    fixed = 2 * (obs_dim * h1p + h1p * h2p) * wbytes + 2 * (h1p + 2 * h2p) * 4
    per_row = 2 * obs_dim * 4 + (h1p + h2p) * 4 + 2 * 4
    while tile_b > _LANE and fixed + tile_b * per_row > budget_bytes:
        tile_b -= _LANE
    return tile_b


def prepare_params(params, compute_dtype=jnp.bfloat16):
    """One-time padding/casting of the MLP weights (hoisted out of forward).

    Weights are stored [in, out] (transposed vs torch nn.Linear's [out, in]).
    Hidden dims are zero-padded to lane multiples (exact: padded columns give
    ReLU(0+0)=0 and padded rows/cols contribute nothing downstream).
    Streaming the hidden weights as bf16 (f32 accumulation on the MXU) is an
    explicit precision choice appropriate for a value head.
    """
    w1, b1 = params["w1"], params["b1"]
    w2, b2 = params["w2"], params["b2"]
    w3, b3 = params["w3"], params["b3"]
    obs_dim, H1 = w1.shape
    H2 = w2.shape[1]
    assert w2.shape[0] == H1
    assert w3.shape == (H2, 1) and b3.shape == (1,)

    h1p = _round_up(H1, _LANE)
    h2p = _round_up(H2, _LANE)
    cd = compute_dtype
    w1p = jnp.zeros((obs_dim, h1p), cd).at[:, :H1].set(w1.astype(cd))
    w2p = jnp.zeros((h1p, h2p), cd).at[:H1, :H2].set(w2.astype(cd))
    b1p = jnp.zeros((1, h1p), jnp.float32).at[0, :H1].set(b1.astype(jnp.float32))
    b2p = jnp.zeros((1, h2p), jnp.float32).at[0, :H2].set(b2.astype(jnp.float32))
    w3p = jnp.zeros((1, h2p), jnp.float32).at[0, :H2].set(
        w3[:, 0].astype(jnp.float32))
    b3p = b3.reshape(1, 1).astype(jnp.float32)
    return {"w1p": w1p, "b1p": b1p, "w2p": w2p, "b2p": b2p,
            "w3p": w3p, "b3p": b3p}


def state_critic_forward(state, prepared, *, tile_b=None):
    """StateCritic forward: values = MLP(obs_dim, 1, hidden_dims)(state).

    state    : [B, obs_dim] float32 (passed to the kernel unpadded, uncast)
    prepared : output of prepare_params() (padded/bf16 weights, f32 biases)
    returns  : [B, 1] float32 values (same semantics as the PyTorch module).
    """
    B, obs_dim = state.shape
    w1p, b1p = prepared["w1p"], prepared["b1p"]
    w2p, b2p = prepared["w2p"], prepared["b2p"]
    w3p, b3p = prepared["w3p"], prepared["b3p"]
    assert w1p.shape[0] == obs_dim
    h1p, h2p = w1p.shape[1], w2p.shape[1]
    wbytes = jnp.dtype(w1p.dtype).itemsize

    budget = _vmem_budget_bytes()
    tile_b = _pick_tile_b(B, obs_dim, h1p, h2p, wbytes, tile_b,
                          budget - 2 * 1024 * 1024)   # small compiler headroom
    num_tiles = -(-B // tile_b)                        # cdiv; ragged tail OK
    b_pad = num_tiles * tile_b

    flops = 2 * B * (obs_dim * h1p + h1p * h2p + h2p)
    bytes_accessed = (B * obs_dim * jnp.dtype(state.dtype).itemsize
                      + (obs_dim * h1p + h1p * h2p) * wbytes
                      + (h1p + 3 * h2p + 1) * 4
                      + b_pad * 4)

    out = pl.pallas_call(
        _critic_mlp_kernel,
        out_shape=jax.ShapeDtypeStruct((1, b_pad), jnp.float32),
        grid_spec=pltpu.PrefetchScalarGridSpec(
            num_scalar_prefetch=0,
            grid=(num_tiles,),
            in_specs=[
                # batch tile of the raw f32 state; last dim equals the full
                # array dim so the (8,128) block rule is satisfied.  The final
                # block may hang off the end of the array: its garbage rows
                # only ever reach output lanes >= B, which are sliced off.
                pl.BlockSpec((tile_b, obs_dim), lambda i: (i, 0)),
                # weights / biases: full arrays, resident across all steps
                pl.BlockSpec((obs_dim, h1p), lambda i: (0, 0)),
                pl.BlockSpec((1, h1p), lambda i: (0, 0)),
                pl.BlockSpec((h1p, h2p), lambda i: (0, 0)),
                pl.BlockSpec((1, h2p), lambda i: (0, 0)),
                pl.BlockSpec((1, h2p), lambda i: (0, 0)),
                # scalar output bias in SMEM (no padded (8,128) VMEM tile)
                pl.BlockSpec(memory_space=pltpu.MemorySpace.SMEM),
            ],
            out_specs=pl.BlockSpec((1, tile_b), lambda i: (0, i)),
        ),
        compiler_params=pltpu.CompilerParams(
            # batch tiles shard across the 2 TensorCores on v7x; no-op elsewhere
            dimension_semantics=("parallel",),
            vmem_limit_bytes=budget,
        ),
        cost_estimate=pl.CostEstimate(flops=flops, transcendentals=0,
                                      bytes_accessed=bytes_accessed),
    )(state, w1p, b1p, w2p, b2p, w3p, b3p)

    # [1, b_pad] lane-dense row -> [B, 1] column, dropping batch padding.
    return out.reshape(b_pad, 1)[:B]


# --------------------------------------------------------------------------
# Init + reference (for the self-check)
# --------------------------------------------------------------------------
def init_params(key, obs_dim, hidden_dims):
    """Deterministic init mirroring MLP(obs_dim, 1, hidden_dims) layer shapes."""
    # TODO(synk): the fused kernel assumes exactly two hidden layers; arbitrary
    # hidden_dims depth would need an in-kernel layer loop or chained kernels.
    assert len(hidden_dims) == 2
    dims = [obs_dim] + list(hidden_dims) + [1]
    keys = jax.random.split(key, 2 * (len(dims) - 1))
    params = {}
    for n, (d_in, d_out) in enumerate(zip(dims[:-1], dims[1:]), start=1):
        kw, kb = keys[2 * (n - 1)], keys[2 * (n - 1) + 1]
        bound = 1.0 / float(d_in) ** 0.5
        # stored as [in, out] (transposed vs torch Linear weight [out, in])
        params[f"w{n}"] = jax.random.uniform(kw, (d_in, d_out), jnp.float32,
                                             -bound, bound)
        params[f"b{n}"] = jax.random.uniform(kb, (d_out,), jnp.float32,
                                             -bound, bound)
    return params


def _reference_forward(state, params, compute_dtype=jnp.float32):
    """Pure-JAX reference; compute_dtype mirrors the kernel's streaming dtype."""
    cd = compute_dtype
    x = state.astype(cd)
    h1 = jnp.dot(x, params["w1"].astype(cd),
                 preferred_element_type=jnp.float32) + params["b1"]
    h1 = jnp.maximum(h1, 0.0)
    h2 = jnp.dot(h1.astype(cd), params["w2"].astype(cd),
                 preferred_element_type=jnp.float32) + params["b2"]
    h2 = jnp.maximum(h2, 0.0)
    v = jnp.sum(h2 * params["w3"][:, 0].astype(jnp.float32), axis=-1,
                keepdims=True) + params["b3"]
    return v


if __name__ == "__main__":
    # Small shapes consistent with the module: batch=16, obs_dim=32, hidden=[64, 64]
    B, obs_dim = 16, 32
    hidden_dims = [64, 64]

    key = jax.random.PRNGKey(0)
    k_state, k_params = jax.random.split(key)
    state = jax.random.normal(k_state, (B, obs_dim), jnp.float32)
    params = init_params(k_params, obs_dim, hidden_dims)

    # Hoisted one-time weight preparation (padding + bf16 cast).
    prepared = prepare_params(params)

    values = state_critic_forward(state, prepared)
    values = jax.block_until_ready(values)
    assert values.shape == (B, 1)

    # Tight check vs a reference using the same bf16-stream / f32-accumulate
    # recipe, and a loose check vs the pure-f32 PyTorch-equivalent forward.
    ref_cd = _reference_forward(state, params, jnp.bfloat16)
    ref_f32 = _reference_forward(state, params, jnp.float32)
    assert jnp.allclose(values, ref_cd, atol=1e-3, rtol=1e-3), "mismatch (bf16 ref)"
    assert jnp.allclose(values, ref_f32, atol=5e-2, rtol=5e-2), "mismatch (f32 ref)"

    print("KERNEL_OK")
</pallas_src>

<mosaic_0001>
module attributes {stable_mosaic.version = 11 : i64} {
  func.func @_critic_mlp_kernel(%arg0: i32, %arg1: memref<128x32xf32, #tpu.memory_space<vmem>>, %arg2: memref<32x128xbf16, #tpu.memory_space<vmem>>, %arg3: memref<1x128xf32, #tpu.memory_space<vmem>>, %arg4: memref<128x128xbf16, #tpu.memory_space<vmem>>, %arg5: memref<1x128xf32, #tpu.memory_space<vmem>>, %arg6: memref<1x128xf32, #tpu.memory_space<vmem>>, %arg7: memref<1x1xf32, #tpu.memory_space<smem>>, %arg8: memref<1x128xf32, #tpu.memory_space<vmem>>) attributes {dimension_semantics = [#tpu.dimension_semantics<parallel>], iteration_bounds = array<i64: 1>, scalar_prefetch = 0 : i64, scratch_operands = 0 : i64, tpu.core_type = #tpu.core_type<tc>, window_params = [{transform_indices = @transform_0, window_bounds = array<i64: 128, 32>}, {pipeline_mode = #tpu.pipeline_mode<synchronous>, transform_indices = @transform_1, window_bounds = array<i64: 32, 128>}, {pipeline_mode = #tpu.pipeline_mode<synchronous>, transform_indices = @transform_2, window_bounds = array<i64: 1, 128>}, {pipeline_mode = #tpu.pipeline_mode<synchronous>, transform_indices = @transform_3, window_bounds = array<i64: 128, 128>}, {pipeline_mode = #tpu.pipeline_mode<synchronous>, transform_indices = @transform_4, window_bounds = array<i64: 1, 128>}, {pipeline_mode = #tpu.pipeline_mode<synchronous>, transform_indices = @transform_5, window_bounds = array<i64: 1, 128>}, {transform_indices = @transform_6, window_bounds = array<i64: 1, 1>}, {transform_indices = @transform_7, window_bounds = array<i64: 1, 128>}]} {
    %c0 = arith.constant 0 : index
    %c0_0 = arith.constant 0 : index
    %0 = vector.load %arg1[%c0, %c0_0] : memref<128x32xf32, #tpu.memory_space<vmem>>, vector<128x32xf32>
    %1 = arith.truncf %0 : vector<128x32xf32> to vector<128x32xbf16>
    %c0_1 = arith.constant 0 : index
    %c0_2 = arith.constant 0 : index
    %2 = vector.load %arg2[%c0_1, %c0_2] : memref<32x128xbf16, #tpu.memory_space<vmem>>, vector<32x128xbf16>
    %cst = arith.constant dense<0.000000e+00> : vector<128x128xf32>
    %3 = tpu.matmul %1, %2, %cst {dimension_numbers = #tpu.dot_dimension_numbers<[1], [0], [0], [1], [0, 0, 1, 1], [], []>} : vector<128x32xbf16>, vector<32x128xbf16>, vector<128x128xf32> -> vector<128x128xf32>
    %c0_3 = arith.constant 0 : index
    %c0_4 = arith.constant 0 : index
    %4 = vector.load %arg3[%c0_3, %c0_4] : memref<1x128xf32, #tpu.memory_space<vmem>>, vector<1x128xf32>
    %5 = vector.broadcast %4 : vector<1x128xf32> to vector<128x128xf32>
    %6 = arith.addf %3, %5 : vector<128x128xf32>
    %cst_5 = arith.constant 0.000000e+00 : f32
    %7 = vector.broadcast %cst_5 : f32 to vector<128x128xf32>
    %8 = arith.maximumf %6, %7 : vector<128x128xf32>
    %9 = arith.truncf %8 : vector<128x128xf32> to vector<128x128xbf16>
    %c0_6 = arith.constant 0 : index
    %c0_7 = arith.constant 0 : index
    %10 = vector.load %arg4[%c0_6, %c0_7] : memref<128x128xbf16, #tpu.memory_space<vmem>>, vector<128x128xbf16>
    %cst_8 = arith.constant dense<0.000000e+00> : vector<128x128xf32>
    %11 = tpu.matmul %9, %10, %cst_8 {dimension_numbers = #tpu.dot_dimension_numbers<[1], [0], [0], [1], [0, 0, 1, 1], [], []>} : vector<128x128xbf16>, vector<128x128xbf16>, vector<128x128xf32> -> vector<128x128xf32>
    %c0_9 = arith.constant 0 : index
    %c0_10 = arith.constant 0 : index
    %12 = vector.load %arg5[%c0_9, %c0_10] : memref<1x128xf32, #tpu.memory_space<vmem>>, vector<1x128xf32>
    %13 = vector.broadcast %12 : vector<1x128xf32> to vector<128x128xf32>
    %14 = arith.addf %11, %13 : vector<128x128xf32>
    %cst_11 = arith.constant 0.000000e+00 : f32
    %15 = vector.broadcast %cst_11 : f32 to vector<128x128xf32>
    %16 = arith.maximumf %14, %15 : vector<128x128xf32>
    %c0_12 = arith.constant 0 : index
    %c0_13 = arith.constant 0 : index
    %17 = vector.load %arg6[%c0_12, %c0_13] : memref<1x128xf32, #tpu.memory_space<vmem>>, vector<1x128xf32>
    %18 = vector.broadcast %17 : vector<1x128xf32> to vector<128x128xf32>
    %19 = arith.mulf %16, %18 : vector<128x128xf32>
    %cst_14 = arith.constant dense<0.000000e+00> : vector<128xf32>
    %20 = vector.multi_reduction <add>, %19, %cst_14 [1] : vector<128x128xf32> to vector<128xf32>
    %c0_15 = arith.constant 0 : index
    %c0_16 = arith.constant 0 : index
    %21 = memref.load %arg7[%c0_15, %c0_16] : memref<1x1xf32, #tpu.memory_space<smem>>
    %22 = vector.broadcast %21 : f32 to vector<128xf32>
    %23 = arith.addf %20, %22 : vector<128xf32>
    %24 = vector.shape_cast %23 : vector<128xf32> to vector<1x128xf32>
    %c0_17 = arith.constant 0 : index
    %c0_18 = arith.constant 0 : index
    %25 = vector.load %arg8[%c0_17, %c0_18] : memref<1x128xf32, #tpu.memory_space<vmem>>, vector<1x128xf32>
    tpu.vector_store %arg8[%c0_17, %c0_18], %24 {strides = array<i32>} : memref<1x128xf32, #tpu.memory_space<vmem>>, vector<1x128xf32>,
    return
  }
  func.func @transform_0(%arg0: i32) -> (i32, i32) {
    %c0_i32 = arith.constant 0 : i32
    %c0_i32_0 = arith.constant 0 : i32
    return %arg0, %c0_i32 : i32, i32
  }
  func.func @transform_1(%arg0: i32) -> (i32, i32) {
    %c0_i32 = arith.constant 0 : i32
    %c0_i32_0 = arith.constant 0 : i32
    %c0_i32_1 = arith.constant 0 : i32
    return %c0_i32, %c0_i32_0 : i32, i32
  }
  func.func @transform_2(%arg0: i32) -> (i32, i32) {
    %c0_i32 = arith.constant 0 : i32
    %c0_i32_0 = arith.constant 0 : i32
    %c0_i32_1 = arith.constant 0 : i32
    return %c0_i32, %c0_i32_0 : i32, i32
  }
  func.func @transform_3(%arg0: i32) -> (i32, i32) {
    %c0_i32 = arith.constant 0 : i32
    %c0_i32_0 = arith.constant 0 : i32
    %c0_i32_1 = arith.constant 0 : i32
    return %c0_i32, %c0_i32_0 : i32, i32
  }
  func.func @transform_4(%arg0: i32) -> (i32, i32) {
    %c0_i32 = arith.constant 0 : i32
    %c0_i32_0 = arith.constant 0 : i32
    %c0_i32_1 = arith.constant 0 : i32
    return %c0_i32, %c0_i32_0 : i32, i32
  }
  func.func @transform_5(%arg0: i32) -> (i32, i32) {
    %c0_i32 = arith.constant 0 : i32
    %c0_i32_0 = arith.constant 0 : i32
    %c0_i32_1 = arith.constant 0 : i32
    return %c0_i32, %c0_i32_0 : i32, i32
  }
  func.func @transform_6(%arg0: i32) -> (i32, i32) {
    %c0_i32 = arith.constant 0 : i32
    %c0_i32_0 = arith.constant 0 : i32
    %c0_i32_1 = arith.constant 0 : i32
    return %c0_i32, %c0_i32_0 : i32, i32
  }
  func.func @transform_7(%arg0: i32) -> (i32, i32) {
    %c0_i32 = arith.constant 0 : i32
    %c0_i32_0 = arith.constant 0 : i32
    return %c0_i32, %arg0 : i32, i32
  }
}

</mosaic_0001>

<bundles_post_ra>
// kernel: tpu_custom_call.1
= control target key start
LH: loop header
LB: loop body
LE: loop exit
PB: predicated region body
PF: predicated region fallthrough
CT: control target
= control target key end

     0   :  { %13 = vsyncpa [#allocation4], 0  ;;  %s1060_s0 = inlined_call_operand.hbm [shape: f32[16,32], index: 0, kind: input, shape index: {}]   ;;  %s1061_s1 = inlined_call_operand.hbm [shape: bf16[32,128], index: 1, kind: input, shape index: {}]   ;;  %s1062_s2 = inlined_call_operand.vmem [shape: f32[1,128], index: 2, kind: input, shape index: {}]   ;;  %s1063_s3 = inlined_call_operand.hbm [shape: bf16[128,128], index: 3, kind: input, shape index: {}]   ;;  %s1064_s4 = inlined_call_operand.vmem [shape: f32[1,128], index: 4, kind: input, shape index: {}]   ;;  %s1065_s5 = inlined_call_operand.vmem [shape: f32[1,128], index: 5, kind: input, shape index: {}]   ;;  %s1066_s6 = inlined_call_operand.<no memory space> [shape: f32[1,1], index: 6, kind: input, shape index: {}]   ;;  %s1067_s7 = inlined_call_operand.hbm [shape: f32[1,128], index: 7, kind: output, shape index: {}]  }
   0x1   :  { %14 = vsyncpa [#allocation7], 0 }
   0x2   :  { %15 = vsyncpa [#allocation5], 0 }
   0x3   :  { %20 = vsyncadd [#allocation4], 1792  ;;  %s884_s24 = smov [#allocation6]  }
   0x4   :  { %s33_s25 = sshll.u32 %s884_s24, 4  ;;  %s34_s25 = int_to_ptr.vmem [resolvable:$true] %s33_s25 }
   0x5   :  { %s806_s26 = scalar_lea.vmem %s34_s25, 256  ;;  %p811_p1 = scmp.lt.s32.totalorder %s34_s25, %s34_s25 }
   0x6   :  { %p807_p0 = scmp.ne.s32.totalorder %s34_s25, %s806_s26  ;;  %p812_p2 = scmp.lt.s32.totalorder %s806_s26, %s806_s26 }
   0x8   :  { %p813_p3 = por %p812_p2, %p811_p1 }
   0xa   :  { %p814_p4 = pnand %p813_p3, %p807_p0 }
   0xc   :  { %817 = shalt.err (!%p814_p4)
}
   0xd   :  { %s885_s27 = smov 64   ;;  %s886_s28 = smov 4  }
   0xe   :  { %39 = dma.hbm_to_vmem [thread:$0]  %s1061_s1, 256, %s34_s25, [#allocation7], %s885_s27, %s885_s27, %s886_s28  }
   0xf   :  { %s887_s8 = smov [#allocation3]  }
  0x10   :  { %s21_s9 = sshll.u32 %s887_s8, 4  ;;  %s22_s9 = int_to_ptr.vmem [resolvable:$true] %s21_s9 }
  0x11   :  { %s826_s10 = scalar_lea.vmem %s22_s9, 256  ;;  %s830_s11 = scalar_lea.vmem %s22_s9, 2048 }
  0x12   :  { %p827_p5 = scmp.ne.s32.totalorder %s22_s9, %s826_s10  ;;  %p831_p6 = scmp.lt.s32.totalorder %s22_s9, %s22_s9 }
  0x13   :  { %p832_p7 = scmp.lt.s32.totalorder %s830_s11, %s826_s10 }
  0x15   :  { %p833_p8 = por %p832_p7, %p831_p6 }
  0x17   :  { %p834_p9 = pnand %p833_p8, %p827_p5 }
  0x19   :  { %837 = shalt.err (!%p834_p9)
}
  0x1a   :  { %s888_s12 = smov 128   ;;  %s889_s13 = smov 8  }
  0x1b   :  { %27 = dma.hbm_to_vmem [thread:$0]  %s1060_s0, 256, %s22_s9, [#allocation4], %s888_s12, %s888_s12, %s889_s13  }
  0x1c   :  { %s890_s16 = smov [#allocation8]  }
  0x1d   :  { %s47_s17 = sshll.u32 %s890_s16, 4  ;;  %s48_s17 = int_to_ptr.vmem [resolvable:$true] %s47_s17 }
  0x1e   :  { %s846_s1 = scalar_lea.vmem %s48_s17, 1024  ;;  %p851_p11 = scmp.lt.s32.totalorder %s48_s17, %s48_s17 }
  0x1f   :  { %p847_p10 = scmp.ne.s32.totalorder %s48_s17, %s846_s1  ;;  %p852_p12 = scmp.lt.s32.totalorder %s846_s1, %s846_s1 }
  0x21   :  { %p853_p13 = por %p852_p12, %p851_p11 }
  0x23   :  { %p854_p0 = pnand %p853_p13, %p847_p10 }
  0x25   :  { %857 = shalt.err (!%p854_p0)
}
  0x26   :  { %53 = dma.hbm_to_vmem [thread:$0]  %s1063_s3, 1024, %s48_s17, [#allocation7], %s885_s27, %s885_s27, %s886_s28  }
  0x27   :  { %878 = dma.done.wait [#allocation4], 2048  }
  0x28   :  { %879 = vsyncadd [#allocation4], 4294965248 }
  0x29   :  { %880 = dma.done.wait [#allocation7], 1280  }
  0x2a   :  { %881 = vsyncadd [#allocation7], 4294966016  ;;  %v788_v0 = vld [vmem:[#allocation6 + $0x8] sm:$0xff]   ;;  %v789_v1 = vld [vmem:[#allocation6] sm:$0xff]   ;;  %vm117_vm0 = vcmask 261120   ;;  %vm547_vm1 = vcmask 130112  }
  0x2b   :  { %712 = vmatprep.subr.bf16.mxu0 %v788_v0  ;;  %v70_v2 = vld [vmem:[#allocation3] sm:$0xff]  ;;  %v71_v3 = vld [vmem:[#allocation3 + $0x8] sm:$0xff]  ;;  %v72_v5 = vld [vmem:[#allocation3 + $0x10] sm:$0xff]  ;;  %vm554_vm2 = vcmask 195712   ;;  %vm561_vm3 = vcmask 261312   ;;  %vm568_vm4 = vcmask 326912  }
  0x2c   :  { %713 = vmatpush3.bf16.msra.mxu0 %v788_v0  ;;  %v86_v4 = vpack.c.bf16 %v71_v3, %v70_v2  ;;  %v73_v6 = vld [vmem:[#allocation3 + $0x18] sm:$0xff]  ;;  %v74_v7 = vld [vmem:[#allocation3 + $0x20] sm:$0xff]  ;;  %v75_v8 = vld [vmem:[#allocation3 + $0x28] sm:$0xff]  ;;  %vm575_vm5 = vcmask 392512   ;;  %vm582_vm6 = vcmask 458112   ;;  %vm589_vm7 = vcmask 523712  }
  0x2d   :  { %714 = vmatprep.subr.bf16.mxu0 %v789_v1  ;;  %v87_v9 = vpack.c.bf16 %v73_v6, %v72_v5  ;;  %v88_v10 = vpack.c.bf16 %v75_v8, %v74_v7  ;;  %v790_v11 = vld [vmem:[#allocation8 + $0x38] sm:$0xff]   ;;  %v76_v12 = vld [vmem:[#allocation3 + $0x30] sm:$0xff]  ;;  %v77_v13 = vld [vmem:[#allocation3 + $0x38] sm:$0xff]  ;;  %vm596_vm8 = vcmask 589312   ;;  %vm603_vm9 = vcmask 654912  }
  0x2e   :  { %716 = vmatprep.mubr.msk.bf16.mxu0 %vm117_vm0, %v86_v4  ;;  %v791_v14 = vld [vmem:[#allocation8 + $0x30] sm:$0xff]   ;;  %v79_v16 = vld [vmem:[#allocation3 + $0x48] sm:$0xff]  ;;  %764 = vmatprep.subr.bf16.mxu1 %v790_v11  ;;  %v792_v17 = vld [vmem:[#allocation8 + $0x28] sm:$0xff]   ;;  %v89_v18 = vpack.c.bf16 %v77_v13, %v76_v12  ;;  %vm610_vm10 = vcmask 720512   ;;  %vm617_vm11 = vcmask 786112   ;;  %vm624_vm12 = vcmask 851712  }
  0x2f   :  { %v78_v15 = vld [vmem:[#allocation3 + $0x40] sm:$0xff]  ;;  %772 = vmatpush3.bf16.msra.mxu1 %v790_v11  ;;  %v793_v20 = vld [vmem:[#allocation8 + $0x20] sm:$0xff]   ;;  %v81_v22 = vld [vmem:[#allocation3 + $0x58] sm:$0xff]  ;;  %vm631_vm13 = vcmask 917312   ;;  %vm638_vm14 = vcmask 982912   ;;  %vm645_vm15 = vcmask 1048512  }
  0x30   :  { %715 = vmatpush3.bf16.msra.mxu0 %v789_v1  ;;  %765 = vmatprep.subr.bf16.mxu1 %v791_v14  ;;  %v90_v19 = vpack.c.bf16 %v79_v16, %v78_v15  ;;  %v80_v21 = vld [vmem:[#allocation3 + $0x50] sm:$0xff]  ;;  %v82_v23 = vld [vmem:[#allocation3 + $0x60] sm:$0xff]  ;;  %v83_v24 = vld [vmem:[#allocation3 + $0x68] sm:$0xff] }
  0x31   :  { %732 = vmatprep.subr.bf16.mxu0 %v790_v11  ;;  %v794_v25 = vld [vmem:[#allocation8 + $0x18] sm:$0xff]   ;;  %v91_v26 = vpack.c.bf16 %v81_v22, %v80_v21  ;;  %v92_v27 = vpack.c.bf16 %v83_v24, %v82_v23  ;;  %v84_v28 = vld [vmem:[#allocation3 + $0x70] sm:$0xff]  ;;  %v85_v29 = vld [vmem:[#allocation3 + $0x78] sm:$0xff] }
  0x32   :  { %v93_v30 = vpack.c.bf16 %v85_v29, %v84_v28  ;;  %v795_v31 = vld [vmem:[#allocation8 + $0x10] sm:$0xff]   ;;  %v796_v32 = vld [vmem:[#allocation8 + $0x8] sm:$0xff]   ;;  %v797_v33 = vld [vmem:[#allocation8] sm:$0xff]  }
  0x33   :  { %717 = vmatmul.mubr.msk.bf16.vlgmr.msra.gmra.mxu0 %vm117_vm0, %v87_v9  ;;  %773 = vmatpush3.bf16.msra.mxu1 %v791_v14  ;;  %v665_v36 = vld [vmem:[%s1062_s2] ss:$0 sm:$0xff] }
  0x34   :  { %720 = vmatprep.mubr.msk.bf16.mxu0 %vm117_vm0, %v88_v10  ;;  %733 = vmatpush3.bf16.msra.mxu0 %v790_v11 }
  0x35   :  { %734 = vmatprep.subr.bf16.mxu0 %v791_v14  ;;  %766 = vmatprep.subr.bf16.mxu1 %v792_v17 }
  0x37   :  { %774 = vmatpush3.bf16.msra.mxu1 %v792_v17 }
  0x38   :  { %735 = vmatpush3.bf16.msra.mxu0 %v791_v14  ;;  %767 = vmatprep.subr.bf16.mxu1 %v793_v20 }
  0x39   :  { %736 = vmatprep.subr.bf16.mxu0 %v792_v17 }
  0x3b   :  { %721 = vmatmul.mubr.msk.bf16.gmra.mxu0 %vm117_vm0, %v89_v18  ;;  %775 = vmatpush3.bf16.msra.mxu1 %v793_v20 }
  0x3c   :  { %724 = vmatprep.mubr.msk.bf16.mxu0 %vm117_vm0, %v90_v19  ;;  %737 = vmatpush3.bf16.msra.mxu0 %v792_v17 }
  0x3d   :  { %738 = vmatprep.subr.bf16.mxu0 %v793_v20  ;;  %768 = vmatprep.subr.bf16.mxu1 %v794_v25 }
  0x3f   :  { %776 = vmatpush3.bf16.msra.mxu1 %v794_v25 }
  0x40   :  { %739 = vmatpush3.bf16.msra.mxu0 %v793_v20  ;;  %769 = vmatprep.subr.bf16.mxu1 %v795_v31 }
  0x41   :  { %740 = vmatprep.subr.bf16.mxu0 %v794_v25 }
  0x43   :  { %725 = vmatmul.mubr.msk.bf16.gmra.mxu0 %vm117_vm0, %v91_v26  ;;  %777 = vmatpush3.bf16.msra.mxu1 %v795_v31 }
  0x44   :  { %728 = vmatprep.mubr.msk.bf16.mxu0 %vm117_vm0, %v92_v27  ;;  %741 = vmatpush3.bf16.msra.mxu0 %v794_v25  ;;  %v961_v27 = vld [vmem:[%s1064_s4] ss:$0 sm:$0xff] }
  0x45   :  { %742 = vmatprep.subr.bf16.mxu0 %v795_v31  ;;  %770 = vmatprep.subr.bf16.mxu1 %v796_v32 }
  0x47   :  { %778 = vmatpush3.bf16.msra.mxu1 %v796_v32 }
  0x48   :  { %743 = vmatpush3.bf16.msra.mxu0 %v795_v31  ;;  %771 = vmatprep.subr.bf16.mxu1 %v797_v33  ;;  %v967_v31 = vld [vmem:[%s1065_s5] ss:$0 sm:$0xff] }
  0x49   :  { %744 = vmatprep.subr.bf16.mxu0 %v796_v32 }
  0x4b   :  { %729 = vmatmul.mubr.msk.bf16.gmra.mxu0 %vm117_vm0, %v93_v30  ;;  %779 = vmatpush3.bf16.msra.mxu1 %v797_v33 }
  0x4c   :  { %745 = vmatpush3.bf16.msra.mxu0 %v796_v32 }
  0x4d   :  { %746 = vmatprep.subr.bf16.mxu0 %v797_v33 }
  0x50   :  { %747 = vmatpush3.bf16.msra.mxu0 %v797_v33 }
  0xf3   :  { %v718_v34 = vpop.f32.mrf.mxu0 }
  0xf4   :  { %v185_v40 = vadd.f32 %v718_v34, %v665_v36 }
  0xf5   :  { %v176_v35 = vpop.f32.mrf.mxu0 }
  0xf6   :  { %v177_v38 = vadd.f32 %v665_v36, %v176_v35  ;;  %v241_v47 = vmax.f32 %v185_v40, 0.0 }
  0xf7   :  { %v719_v37 = vpop.f32.mrf.mxu0 }
  0xf8   :  { %v188_v39 = vadd.f32 %v719_v37, %v665_v36  ;;  %v239_v45 = vmax.f32 %v177_v38, 0.0 }
  0xf9   :  { %v179_v41 = vpop.f32.mrf.mxu0 }
  0xfa   :  { %v180_v42 = vadd.f32 %v665_v36, %v179_v41  ;;  %v242_v43 = vmax.f32 %v188_v39, 0.0 }
  0xfb   :  { %v722_v44 = vpop.f32.mrf.mxu0 }
  0xfc   :  { %v240_v46 = vmax.f32 %v180_v42, 0.0  ;;  %v256_v50 = vpack.c.bf16 %v242_v43, %v241_v47  ;;  %v201_v54 = vadd.f32 %v722_v44, %v665_v36 }
  0xfd   :  { %v192_v48 = vpop.f32.mrf.mxu0 }
  0xfe   :  { %v255_v49 = vpack.c.bf16 %v240_v46, %v239_v45  ;;  %v193_v52 = vadd.f32 %v665_v36, %v192_v48  ;;  %v245_v61 = vmax.f32 %v201_v54, 0.0 }
  0xff   :  { %v723_v51 = vpop.f32.mrf.mxu0 }
 0x100   :  { %v204_v53 = vadd.f32 %v723_v51, %v665_v36  ;;  %748 = vmatprep.mubr.bf16.mxu0 %v255_v49  ;;  %v243_v59 = vmax.f32 %v193_v52, 0.0 }
 0x101   :  { %v195_v55 = vpop.f32.mrf.mxu0  ;;  %749 = vmatmul.mubr.bf16.vlgmr.msra.gmra.mxu0 %v256_v50 }
 0x102   :  { %v196_v56 = vadd.f32 %v665_v36, %v195_v55  ;;  %v246_v57 = vmax.f32 %v204_v53, 0.0 }
 0x103   :  { %v726_v58 = vpop.f32.mrf.mxu0 }
 0x104   :  { %v244_v60 = vmax.f32 %v196_v56, 0.0  ;;  %v258_v0 = vpack.c.bf16 %v246_v57, %v245_v61  ;;  %v217_v4 = vadd.f32 %v726_v58, %v665_v36 }
 0x105   :  { %v208_v62 = vpop.f32.mrf.mxu0 }
 0x106   :  { %v257_v63 = vpack.c.bf16 %v244_v60, %v243_v59  ;;  %v209_v2 = vadd.f32 %v665_v36, %v208_v62  ;;  %v249_v11 = vmax.f32 %v217_v4, 0.0 }
 0x107   :  { %v727_v1 = vpop.f32.mrf.mxu0 }
 0x108   :  { %v220_v3 = vadd.f32 %v727_v1, %v665_v36  ;;  %752 = vmatprep.mubr.bf16.mxu1 %v257_v63  ;;  %v247_v9 = vmax.f32 %v209_v2, 0.0 }
 0x109   :  { %v211_v5 = vpop.f32.mrf.mxu0  ;;  %753 = vmatmul.mubr.bf16.vlgmr.msra.gmra.mxu1 %v258_v0 }
 0x10a   :  { %v212_v6 = vadd.f32 %v665_v36, %v211_v5  ;;  %v250_v7 = vmax.f32 %v220_v3, 0.0 }
 0x10b   :  { %v730_v8 = vpop.f32.mrf.mxu0 }
 0x10c   :  { %v248_v10 = vmax.f32 %v212_v6, 0.0  ;;  %v260_v14 = vpack.c.bf16 %v250_v7, %v249_v11  ;;  %v233_v18 = vadd.f32 %v730_v8, %v665_v36 }
 0x10d   :  { %v224_v12 = vpop.f32.mrf.mxu0 }
 0x10e   :  { %v259_v13 = vpack.c.bf16 %v248_v10, %v247_v9  ;;  %v225_v16 = vadd.f32 %v665_v36, %v224_v12  ;;  %v253_v24 = vmax.f32 %v233_v18, 0.0 }
 0x10f   :  { %v731_v15 = vpop.f32.mrf.mxu0 }
 0x110   :  { %v236_v17 = vadd.f32 %v731_v15, %v665_v36  ;;  %756 = vmatprep.mubr.bf16.mxu1 %v259_v13  ;;  %v251_v22 = vmax.f32 %v225_v16, 0.0 }
 0x111   :  { %v227_v19 = vpop.f32.mrf.mxu0  ;;  %757 = vmatmul.mubr.bf16.gmra.mxu1 %v260_v14 }
 0x112   :  { %v228_v20 = vadd.f32 %v665_v36, %v227_v19  ;;  %v254_v21 = vmax.f32 %v236_v17, 0.0 }
 0x114   :  { %v252_v23 = vmax.f32 %v228_v20, 0.0  ;;  %v262_v26 = vpack.c.bf16 %v254_v21, %v253_v24 }
 0x116   :  { %v261_v25 = vpack.c.bf16 %v252_v23, %v251_v22 }
 0x118   :  { %760 = vmatprep.mubr.bf16.mxu1 %v261_v25 }
 0x119   :  { %761 = vmatmul.mubr.bf16.gmra.mxu1 %v262_v26 }
 0x1c1   :  { %v750_v28 = vpop.f32.mrf.mxu0 }
 0x1c2   :  { %v377_v29 = vadd.f32 %v750_v28, %v961_v27 }
 0x1c3   :  { %v368_v30 = vpop.f32.mrf.mxu0 }
 0x1c4   :  { %v433_v32 = vmax.f32 %v377_v29, 0.0  ;;  %v369_v33 = vadd.f32 %v961_v27, %v368_v30  ;;  %v536_v30 = vlaneseq }
 0x1c5   :  { %v751_v34 = vpop.f32.mrf.mxu0 }
 0x1c6   :  { %v431_v35 = vmax.f32 %v369_v33, 0.0  ;;  %v380_v36 = vadd.f32 %v751_v34, %v961_v27  ;;  %v456_v37 = vmul.f32 %v967_v31, %v433_v32  ;;  %v1000_v32 = vand.u32 127, %v536_v30 }
 0x1c7   :  { %v371_v38 = vpop.f32.mrf.mxu0 }
 0x1c8   :  { %v434_v39 = vmax.f32 %v380_v36, 0.0  ;;  %v372_v40 = vadd.f32 %v961_v27, %v371_v38  ;;  %474 = vadd.xlane.f32.xlu1 %v456_v37  ;;  %v454_v41 = vmul.f32 %v967_v31, %v431_v35  ;;  %v1003_v35 = vshrl.u32 %v536_v30, 7 }
 0x1c9   :  { %v754_v42 = vpop.f32.mrf.mxu1  ;;  %v549_v36 = vadd.s32 4294967280, %v1000_v32  ;;  %v1009_v37 = vstv %s1066_s6  ;;  %s891_s6 = smov [#allocation9]  }
 0x1ca   :  { %v432_v43 = vmax.f32 %v372_v40, 0.0  ;;  %v393_v44 = vadd.f32 %v754_v42, %v961_v27  ;;  %470 = vadd.xlane.f32.xlu0 %v454_v41  ;;  %v457_v45 = vmul.f32 %v967_v31, %v434_v39  ;;  %v556_v41 = vadd.s32 4294967272, %v1000_v32  ;;  %s655_s23 = sshll.u32 %s891_s6, 4  ;;  %s656_s23 = int_to_ptr.vmem [resolvable:$true] %s655_s23 }
 0x1cb   :  { %v384_v46 = vpop.f32.mrf.mxu1  ;;  %s858_s24 = scalar_lea.vmem %s656_s23, 16  ;;  %s862_s25 = scalar_lea.vmem %s656_s23, 32 }
 0x1cc   :  { %v437_v47 = vmax.f32 %v393_v44, 0.0  ;;  %v385_v48 = vadd.f32 %v961_v27, %v384_v46  ;;  %476 = vadd.xlane.f32.xlu1 %v457_v45  ;;  %v455_v49 = vmul.f32 %v967_v31, %v432_v43  ;;  %v552_v43 = vsub.s32 %v549_v36, %v1003_v35  ;;  %p859_p1 = scmp.ne.s32.totalorder %s656_s23, %s858_s24  ;;  %p863_p2 = scmp.lt.s32.totalorder %s656_s23, %s656_s23 }
 0x1cd   :  { %v755_v50 = vpop.f32.mrf.mxu1  ;;  %p864_p3 = scmp.lt.s32.totalorder %s862_s25, %s858_s24 }
 0x1ce   :  { %v396_v51 = vadd.f32 %v755_v50, %v961_v27  ;;  %472 = vadd.xlane.f32.xlu0 %v455_v49  ;;  %v435_v53 = vmax.f32 %v385_v48, 0.0  ;;  %v460_v56 = vmul.f32 %v967_v31, %v437_v47  ;;  %v563_v47 = vadd.s32 4294967264, %v1000_v32 }
 0x1cf   :  { %v387_v52 = vpop.f32.mrf.mxu1  ;;  %v559_v50 = vsub.s32 %v556_v41, %v1003_v35  ;;  %p865_p4 = por %p864_p3, %p863_p2 }
 0x1d0   :  { %v438_v54 = vmax.f32 %v396_v51, 0.0  ;;  %v388_v55 = vadd.f32 %v961_v27, %v387_v52  ;;  %v458_v0 = vmul.f32 %v967_v31, %v435_v53  ;;  %v570_v51 = vadd.s32 4294967256, %v1000_v32 }
 0x1d1   :  { %v758_v57 = vpop.f32.mrf.mxu1  ;;  %p866_p5 = pnand %p865_p4, %p859_p1 }
 0x1d2   :  { %v436_v58 = vmax.f32 %v388_v55, 0.0  ;;  %v409_v59 = vadd.f32 %v758_v57, %v961_v27  ;;  %482 = vadd.xlane.f32.xlu0 %v460_v56  ;;  %v461_v60 = vmul.f32 %v967_v31, %v438_v54  ;;  %v577_v54 = vadd.s32 4294967248, %v1000_v32 }
 0x1d3   :  { %v400_v61 = vpop.f32.mrf.mxu1  ;;  %v566_v57 = vsub.s32 %v563_v47, %v1003_v35  ;;  %v640_v47 = vadd.s32 4294967176, %v1000_v32 }
 0x1d4   :  { %v441_v62 = vmax.f32 %v409_v59, 0.0  ;;  %v401_v63 = vadd.f32 %v961_v27, %v400_v61  ;;  %484 = vadd.xlane.f32.xlu1 %v461_v60  ;;  %v459_v3 = vmul.f32 %v967_v31, %v436_v58  ;;  %v573_v61 = vsub.s32 %v570_v51, %v1003_v35 }
 0x1d5   :  { %v759_v1 = vpop.f32.mrf.mxu1 }
 0x1d6   :  { %v412_v2 = vadd.f32 %v759_v1, %v961_v27  ;;  %478 = vadd.xlane.f32.xlu0 %v458_v0  ;;  %v439_v5 = vmax.f32 %v401_v63, 0.0  ;;  %v464_v8 = vmul.f32 %v967_v31, %v441_v62  ;;  %v580_v63 = vsub.s32 %v577_v54, %v1003_v35 }
 0x1d7   :  { %v403_v4 = vpop.f32.mrf.mxu1  ;;  %v584_v0 = vadd.s32 4294967240, %v1000_v32 }
 0x1d8   :  { %v442_v6 = vmax.f32 %v412_v2, 0.0  ;;  %v404_v7 = vadd.f32 %v961_v27, %v403_v4  ;;  %480 = vadd.xlane.f32.xlu1 %v459_v3  ;;  %v462_v15 = vmul.f32 %v967_v31, %v439_v5  ;;  %v591_v5 = vadd.s32 4294967232, %v1000_v32 }
 0x1d9   :  { %v762_v9 = vpop.f32.mrf.mxu1 }
 0x1da   :  { %v440_v10 = vmax.f32 %v404_v7, 0.0  ;;  %490 = vadd.xlane.f32.xlu0 %v464_v8  ;;  %v465_v11 = vmul.f32 %v967_v31, %v442_v6  ;;  %v425_v13 = vadd.f32 %v762_v9, %v961_v27  ;;  %v605_v7 = vadd.s32 4294967216, %v1000_v32 }
 0x1db   :  { %v416_v12 = vpop.f32.mrf.mxu1 }
 0x1dc   :  { %v417_v14 = vadd.f32 %v961_v27, %v416_v12  ;;  %492 = vadd.xlane.f32.xlu1 %v465_v11  ;;  %v463_v18 = vmul.f32 %v967_v31, %v440_v10  ;;  %v445_v20 = vmax.f32 %v425_v13, 0.0  ;;  %v598_v11 = vadd.s32 4294967224, %v1000_v32 }
 0x1dd   :  { %v763_v16 = vpop.f32.mrf.mxu1  ;;  %v587_v12 = vsub.s32 %v584_v0, %v1003_v35 }
 0x1de   :  { %v443_v17 = vmax.f32 %v417_v14, 0.0  ;;  %486 = vadd.xlane.f32.xlu0 %v462_v15  ;;  %v428_v21 = vadd.f32 %v763_v16, %v961_v27  ;;  %v468_v28 = vmul.f32 %v967_v31, %v445_v20  ;;  %v612_v14 = vadd.s32 4294967208, %v1000_v32 }
 0x1df   :  { %v419_v19 = vpop.f32.mrf.mxu1 }
 0x1e0   :  { %v420_v22 = vadd.f32 %v961_v27, %v419_v19  ;;  %488 = vadd.xlane.f32.xlu1 %v463_v18  ;;  %v466_v23 = vmul.f32 %v967_v31, %v443_v17  ;;  %v446_v25 = vmax.f32 %v428_v21, 0.0  ;;  %v542_v27 = vadd.s32 4294967288, %v1000_v32 }
 0x1e1   :  { %v594_v18 = vsub.s32 %v591_v5, %v1003_v35  ;;  %v608_v19 = vsub.s32 %v605_v7, %v1003_v35  ;;  %v619_v21 = vadd.s32 4294967200, %v1000_v32 }
 0x1e2   :  { %v444_v24 = vmax.f32 %v420_v22, 0.0  ;;  %494 = vadd.xlane.f32.xlu0 %v466_v23  ;;  %v469_v29 = vmul.f32 %v967_v31, %v446_v25  ;;  %v545_v38 = vsub.s32 %v542_v27, %v1003_v35 }
 0x1e4   :  { %v467_v26 = vmul.f32 %v967_v31, %v444_v24  ;;  %v540_v31 = vsub.s32 %v1000_v32, %v1003_v35  ;;  %v601_v24 = vsub.s32 %v598_v11, %v1003_v35 }
 0x1e6   :  { %496 = vadd.xlane.f32.xlu1 %v467_v26  ;;  %498 = vadd.xlane.f32.xlu0 %v468_v28  ;;  %v615_v28 = vsub.s32 %v612_v14, %v1003_v35 }
 0x1ea   :  { %500 = vadd.xlane.f32.xlu1 %v469_v29 }
 0x251   :  { %v475_v33 = vpop.xlane.xlu1 %474 }
 0x252   :  { %v506_v45 = vadd.f32 %v1009_v37, %v475_v33 }
 0x253   :  { %v471_v34 = vpop.xlane.xlu0 %470 }
 0x254   :  { %v504_v39 = vadd.f32 %v1009_v37, %v471_v34  ;;  %v553_v56 = vrot.slane %v506_v45, %v552_v43  ;;  %v626_v34 = vadd.s32 4294967192, %v1000_v32 }
 0x255   :  { %v477_v44 = vpop.xlane.xlu1 %476 }
 0x256   :  { %v541_v48 = vrot.slane %v504_v39, %v540_v31  ;;  %v507_v52 = vadd.f32 %v1009_v37, %v477_v44  ;;  %v633_v39 = vadd.s32 4294967184, %v1000_v32 }
 0x257   :  { %v473_v40 = vpop.xlane.xlu0 %472 }
 0x258   :  { %v505_v42 = vadd.f32 %v1009_v37, %v473_v40  ;;  %v560_v62 = vrot.slane %v507_v52, %v559_v50  ;;  %v636_v51 = vsub.s32 %v633_v39, %v1003_v35 }
 0x25a   :  { %v546_v46 = vrot.slane %v505_v42, %v545_v38  ;;  %v622_v38 = vsub.s32 %v619_v21, %v1003_v35 }
 0x25b   :  { %v483_v49 = vpop.xlane.xlu0 %482 }
 0x25c   :  { %v548_v53 = vsel %vm547_vm1, %v546_v46, %v541_v48  ;;  %v510_v2 = vadd.f32 %v1009_v37, %v483_v49  ;;  %v629_v46 = vsub.s32 %v626_v34, %v1003_v35 }
 0x25d   :  { %v485_v55 = vpop.xlane.xlu1 %484  ;;  %v555_v59 = vsel %vm554_vm2, %v553_v56, %v548_v53 }
 0x25e   :  { %v562_v6 = vsel %vm561_vm3, %v560_v62, %v555_v59  ;;  %v511_v13 = vadd.f32 %v1009_v37, %v485_v55  ;;  %v581_v16 = vrot.slane %v510_v2, %v580_v63 }
 0x25f   :  { %v479_v58 = vpop.xlane.xlu0 %478 }
 0x260   :  { %v508_v60 = vadd.f32 %v1009_v37, %v479_v58  ;;  %v588_v25 = vrot.slane %v511_v13, %v587_v12 }
 0x261   :  { %v481_v1 = vpop.xlane.xlu1 %480 }
 0x262   :  { %v567_v3 = vrot.slane %v508_v60, %v566_v57  ;;  %v509_v4 = vadd.f32 %v1009_v37, %v481_v1  ;;  %v643_v57 = vsub.s32 %v640_v47, %v1003_v35 }
 0x263   :  { %v491_v8 = vpop.xlane.xlu0 %490 }
 0x264   :  { %v569_v9 = vsel %vm568_vm4, %v567_v3, %v562_v6  ;;  %v574_v10 = vrot.slane %v509_v4, %v573_v61  ;;  %v514_v26 = vadd.f32 %v1009_v37, %v491_v8 }
 0x265   :  { %v493_v15 = vpop.xlane.xlu1 %492 }
 0x266   :  { %v576_v17 = vsel %vm575_vm5, %v574_v10, %v569_v9  ;;  %v515_v30 = vadd.f32 %v1009_v37, %v493_v15  ;;  %v609_v43 = vrot.slane %v514_v26, %v608_v19 }
 0x267   :  { %v487_v20 = vpop.xlane.xlu0 %486  ;;  %v583_v22 = vsel %vm582_vm6, %v581_v16, %v576_v17 }
 0x268   :  { %v512_v23 = vadd.f32 %v1009_v37, %v487_v20  ;;  %v590_v36 = vsel %vm589_vm7, %v588_v25, %v583_v22  ;;  %v616_v44 = vrot.slane %v515_v30, %v615_v28 }
 0x269   :  { %v489_v29 = vpop.xlane.xlu1 %488 }
 0x26a   :  { %v595_v27 = vrot.slane %v512_v23, %v594_v18  ;;  %v513_v33 = vadd.f32 %v1009_v37, %v489_v29 }
 0x26b   :  { %v495_v31 = vpop.xlane.xlu0 %494 }
 0x26c   :  { %v597_v40 = vsel %vm596_vm8, %v595_v27, %v590_v36  ;;  %v602_v41 = vrot.slane %v513_v33, %v601_v24  ;;  %v516_v42 = vadd.f32 %v1009_v37, %v495_v31 }
 0x26e   :  { %v604_v45 = vsel %vm603_vm9, %v602_v41, %v597_v40  ;;  %v623_v49 = vrot.slane %v516_v42, %v622_v38 }
 0x26f   :  { %v611_v48 = vsel %vm610_vm10, %v609_v43, %v604_v45  ;;  %v497_v50 = vpop.xlane.xlu1 %496  ;;  %v499_v52 = vpop.xlane.xlu0 %498 }
 0x270   :  { %v618_v53 = vsel %vm617_vm11, %v616_v44, %v611_v48  ;;  %v517_v54 = vadd.f32 %v1009_v37, %v497_v50  ;;  %v518_v55 = vadd.f32 %v1009_v37, %v499_v52 }
 0x271   :  { %v625_v58 = vsel %vm624_vm12, %v623_v49, %v618_v53 }
 0x272   :  { %v630_v56 = vrot.slane %v517_v54, %v629_v46  ;;  %v637_v59 = vrot.slane %v518_v55, %v636_v51 }
 0x273   :  { %v501_v60 = vpop.xlane.xlu1 %500 }
 0x274   :  { %v632_v32 = vsel %vm631_vm13, %v630_v56, %v625_v58  ;;  %v519_v61 = vadd.f32 %v1009_v37, %v501_v60 }
 0x275   :  { %v639_v63 = vsel %vm638_vm14, %v637_v59, %v632_v32 }
 0x276   :  { %v644_v62 = vrot.slane %v519_v61, %v643_v57 }
 0x278   :  { %v646_v0 = vsel %vm645_vm15, %v644_v62, %v639_v63 }
 0x279   :  { %648 = vst [vmem:[#allocation9] sm:$0x1] %v646_v0 }
 0x27a   :  { %869 = shalt.err (!%p866_p5)
}
 0x27b   :  { %658 = dma.vmem_to_hbm [thread:$0]  %s656_s23, 16, %s1067_s7, [#allocation5]  }
 0x27c   :  { %882 = dma.done.wait [#allocation5], 16  }
 0x27d   :  { %883 = vsyncadd [#allocation5], 4294967280 }
 0x27e   :  { %662 = vsyncpa [#allocation4], 1 }
 0x27f   :  { %663 = vsyncpa [#allocation7], 1 }
 0x280   :  { %664 = vsyncpa [#allocation5], 1 }

</bundles_post_ra>
